<compile_context>
chip_gen: v7x
topology: tpu7x:2x2x1
jax: 0.10.0
libtpu: 0.0.40
codegen_flags: <defaults>
</compile_context>

<pallas_src>
import math
import jax
import jax.numpy as jnp
from jax import lax
from jax.experimental import pallas as pl
from jax.experimental.pallas import tpu as pltpu


def _attn_kernel(x_ref, w_ref, o_ref):
    # x_ref: (B*T, E) bf16   w_ref: (3, E, H) bf16 (Wq pre-scaled by 1/sqrt(H))
    # o_ref: (B, T, H) f32
    B, T, H = o_ref.shape
    x = x_ref[...]                                                  # (B*T, E) bf16

    # Fused-batch QKV projections: all B*T rows in one MXU pass per weight,
    # bf16 operands, f32 accumulation.  q/k/v come from the leading axis of
    # the stacked weight, so there is no lane-level slicing of a (T,3H) result.
    q = jnp.dot(x, w_ref[0], preferred_element_type=jnp.float32)   # (B*T, H), pre-scaled
    k = jnp.dot(x, w_ref[1], preferred_element_type=jnp.float32)
    v = jnp.dot(x, w_ref[2], preferred_element_type=jnp.float32)
    q = q.astype(jnp.bfloat16)
    k = k.astype(jnp.bfloat16)
    v = v.astype(jnp.bfloat16)

    # Causal mask, hoisted out of the per-batch loop (JAX does not CSE
    # broadcast_in_dim).  Large finite negative instead of -inf so a fully
    # masked row in padded/windowed variants can't produce NaN.
    row = lax.broadcasted_iota(jnp.int32, (T, T), 0)
    col = lax.broadcasted_iota(jnp.int32, (T, T), 1)
    causal = col <= row

    # B is tiny and static: unrolled Python loop; the row slices below are
    # sublane-tile aligned (T == 8), so they are cheap.
    for b in range(B):
        qb = q[b * T:(b + 1) * T, :]                                # (T, H)
        kb = k[b * T:(b + 1) * T, :]
        vb = v[b * T:(b + 1) * T, :]

        # q @ k^T via dot_general contracting on H — no materialized transpose.
        s = lax.dot_general(qb, kb, (((1,), (1,)), ((), ())),
                            preferred_element_type=jnp.float32)    # (T, T) f32
        s = jnp.where(causal, s, jnp.float32(-1e30))

        # Numerically stable softmax; normalization deferred past the PV
        # matmul so the divide touches a (T,H) tensor instead of (T,T).
        m = jnp.max(s, axis=-1, keepdims=True)
        e = jnp.exp(s - m)                                          # (T, T) f32
        denom = jnp.sum(e, axis=-1, keepdims=True)                  # (T, 1)
        pv = jnp.dot(e.astype(jnp.bfloat16), vb,
                     preferred_element_type=jnp.float32)            # (T, H)
        out_b = pv * pl.reciprocal(denom, approx=True)              # EUP vrcp

        # Dropout(p=0.2) on the attention probabilities: eval-mode identity.
        o_ref[b] = out_b.astype(o_ref.dtype)


def fuse_qkv_weights(wq, wk, wv):
    """Pre-fuse at parameter-init time (NOT per forward call).

    Stacks the three (E, H) projection weights into a (3, E, H) bf16 array and
    folds the 1/sqrt(H) attention scale into the Wq slab, so the kernel does
    no per-(T,T) scaling and the wrapper does no per-call concatenation.
    """
    H = wq.shape[1]
    scale = 1.0 / math.sqrt(H)
    return jnp.stack([wq * scale, wk, wv], axis=0).astype(jnp.bfloat16)


@jax.jit
def self_attention_decoder(x, w_qkv):
    """x: (B, T, E) float32; w_qkv: (3, E, H) bf16 from fuse_qkv_weights.

    Returns (B, T, H) float32 — causal self-attention, dropout in eval mode.
    """
    B, T, E = x.shape
    H = w_qkv.shape[-1]
    x_flat = x.reshape(B * T, E).astype(jnp.bfloat16)

    # Single invocation, no grid: the whole problem (a few KB) lives in VMEM,
    # so we skip grid-step and megacore-sharding overhead entirely.
    return pl.pallas_call(
        _attn_kernel,
        out_shape=jax.ShapeDtypeStruct((B, T, H), jnp.float32),
        in_specs=[
            pl.BlockSpec(memory_space=pltpu.MemorySpace.VMEM),
            pl.BlockSpec(memory_space=pltpu.MemorySpace.VMEM),
        ],
        out_specs=pl.BlockSpec(memory_space=pltpu.MemorySpace.VMEM),
    )(x_flat, w_qkv)


def reference(x, wq, wk, wv):
    q = x @ wq
    k = x @ wk
    v = x @ wv
    scores = q @ jnp.swapaxes(k, -2, -1) / math.sqrt(k.shape[-1])
    T = k.shape[1]
    tril = jnp.tril(jnp.ones((T, T)))
    scores = jnp.where(tril == 0, -jnp.inf, scores)
    probs = jax.nn.softmax(scores, axis=-1)
    return probs @ v


if __name__ == "__main__":
    # Module hyper-params: embedding_size=32, head_size=16, block_size=8
    B, T, E, H = 2, 8, 32, 16

    key = jax.random.PRNGKey(0)
    kx, kq, kk, kv = jax.random.split(key, 4)
    x = jax.random.normal(kx, (B, T, E), dtype=jnp.float32)
    # deterministic "Linear" weights (stored transposed relative to nn.Linear.weight)
    bound = 1.0 / math.sqrt(E)
    wq = jax.random.uniform(kq, (E, H), jnp.float32, -bound, bound)
    wk = jax.random.uniform(kk, (E, H), jnp.float32, -bound, bound)
    wv = jax.random.uniform(kv, (E, H), jnp.float32, -bound, bound)

    w_qkv = fuse_qkv_weights(wq, wk, wv)   # once, at "init" time

    out = self_attention_decoder(x, w_qkv)
    out = jax.block_until_ready(out)
    assert out.shape == (B, T, H)

    # Reference computed from the same bf16-quantized operands the kernel
    # consumes, so the tolerance only needs to cover in-kernel bf16 rounding
    # (q/k/v, exp numerator) and the EUP approximate reciprocal (~2^-12).
    # 1/sqrt(16) = 0.25 is a power of two, so folding/unfolding it is exact.
    scale = 1.0 / math.sqrt(H)
    xq = x.astype(jnp.bfloat16).astype(jnp.float32)
    wqq = (wq * scale).astype(jnp.bfloat16).astype(jnp.float32) / scale
    wkq = wk.astype(jnp.bfloat16).astype(jnp.float32)
    wvq = wv.astype(jnp.bfloat16).astype(jnp.float32)
    ref = reference(xq, wqq, wkq, wvq)
    assert jnp.allclose(out, ref, atol=1e-2, rtol=1e-2), "mismatch vs reference"

    print("KERNEL_OK")
</pallas_src>

<mosaic_0001>
module attributes {stable_mosaic.version = 11 : i64} {
  func.func @_attn_kernel(%arg0: memref<16x32xbf16, #tpu.memory_space<vmem>>, %arg1: memref<3x32x16xbf16, #tpu.memory_space<vmem>>, %arg2: memref<2x8x16xf32, #tpu.memory_space<vmem>>) attributes {dimension_semantics = [], scalar_prefetch = 0 : i64, scratch_operands = 0 : i64, tpu.core_type = #tpu.core_type<tc>} {
    %c0 = arith.constant 0 : index
    %c0_0 = arith.constant 0 : index
    %0 = vector.load %arg0[%c0, %c0_0] : memref<16x32xbf16, #tpu.memory_space<vmem>>, vector<16x32xbf16>
    %c0_1 = arith.constant 0 : index
    %c0_2 = arith.constant 0 : index
    %c0_3 = arith.constant 0 : index
    %1 = vector.load %arg1[%c0_1, %c0_2, %c0_3] : memref<3x32x16xbf16, #tpu.memory_space<vmem>>, vector<1x32x16xbf16>
    %2 = vector.shape_cast %1 : vector<1x32x16xbf16> to vector<32x16xbf16>
    %cst = arith.constant dense<0.000000e+00> : vector<16x16xf32>
    %3 = tpu.matmul %0, %2, %cst {dimension_numbers = #tpu.dot_dimension_numbers<[1], [0], [0], [1], [0, 0, 1, 1], [], []>} : vector<16x32xbf16>, vector<32x16xbf16>, vector<16x16xf32> -> vector<16x16xf32>
    %c1 = arith.constant 1 : index
    %c0_4 = arith.constant 0 : index
    %c0_5 = arith.constant 0 : index
    %4 = vector.load %arg1[%c1, %c0_4, %c0_5] : memref<3x32x16xbf16, #tpu.memory_space<vmem>>, vector<1x32x16xbf16>
    %5 = vector.shape_cast %4 : vector<1x32x16xbf16> to vector<32x16xbf16>
    %cst_6 = arith.constant dense<0.000000e+00> : vector<16x16xf32>
    %6 = tpu.matmul %0, %5, %cst_6 {dimension_numbers = #tpu.dot_dimension_numbers<[1], [0], [0], [1], [0, 0, 1, 1], [], []>} : vector<16x32xbf16>, vector<32x16xbf16>, vector<16x16xf32> -> vector<16x16xf32>
    %c2 = arith.constant 2 : index
    %c0_7 = arith.constant 0 : index
    %c0_8 = arith.constant 0 : index
    %7 = vector.load %arg1[%c2, %c0_7, %c0_8] : memref<3x32x16xbf16, #tpu.memory_space<vmem>>, vector<1x32x16xbf16>
    %8 = vector.shape_cast %7 : vector<1x32x16xbf16> to vector<32x16xbf16>
    %cst_9 = arith.constant dense<0.000000e+00> : vector<16x16xf32>
    %9 = tpu.matmul %0, %8, %cst_9 {dimension_numbers = #tpu.dot_dimension_numbers<[1], [0], [0], [1], [0, 0, 1, 1], [], []>} : vector<16x32xbf16>, vector<32x16xbf16>, vector<16x16xf32> -> vector<16x16xf32>
    %10 = arith.truncf %3 : vector<16x16xf32> to vector<16x16xbf16>
    %11 = arith.truncf %6 : vector<16x16xf32> to vector<16x16xbf16>
    %12 = arith.truncf %9 : vector<16x16xf32> to vector<16x16xbf16>
    %13 = tpu.iota {dimensions = array<i32: 0>} : vector<8x8xi32>
    %14 = tpu.iota {dimensions = array<i32: 1>} : vector<8x8xi32>
    %15 = arith.cmpi sle, %14, %13 : vector<8x8xi32>
    %16 = vector.extract_strided_slice %10 {offsets = [0, 0], sizes = [8, 16], strides = [1, 1]} : vector<16x16xbf16> to vector<8x16xbf16>
    %17 = vector.extract_strided_slice %11 {offsets = [0, 0], sizes = [8, 16], strides = [1, 1]} : vector<16x16xbf16> to vector<8x16xbf16>
    %18 = vector.extract_strided_slice %12 {offsets = [0, 0], sizes = [8, 16], strides = [1, 1]} : vector<16x16xbf16> to vector<8x16xbf16>
    %cst_10 = arith.constant dense<0.000000e+00> : vector<8x8xf32>
    %19 = tpu.matmul %16, %17, %cst_10 {dimension_numbers = #tpu.dot_dimension_numbers<[1], [1], [0], [0], [0, 0, 1, 0], [], []>} : vector<8x16xbf16>, vector<8x16xbf16>, vector<8x8xf32> -> vector<8x8xf32>
    %cst_11 = arith.constant -1.000000e+30 : f32
    %20 = vector.broadcast %cst_11 : f32 to vector<8x8xf32>
    %21 = arith.select %15, %19, %20 : vector<8x8xi1>, vector<8x8xf32>
    %cst_12 = arith.constant dense<0xFF800000> : vector<8xf32>
    %22 = vector.multi_reduction <maximumf>, %21, %cst_12 [1] : vector<8x8xf32> to vector<8xf32>
    %23 = vector.shape_cast %22 : vector<8xf32> to vector<8x1xf32>
    %24 = vector.broadcast %23 : vector<8x1xf32> to vector<8x8xf32>
    %25 = arith.subf %21, %24 : vector<8x8xf32>
    %26 = math.exp %25 : vector<8x8xf32>
    %cst_13 = arith.constant dense<0.000000e+00> : vector<8xf32>
    %27 = vector.multi_reduction <add>, %26, %cst_13 [1] : vector<8x8xf32> to vector<8xf32>
    %28 = vector.shape_cast %27 : vector<8xf32> to vector<8x1xf32>
    %29 = arith.truncf %26 : vector<8x8xf32> to vector<8x8xbf16>
    %cst_14 = arith.constant dense<0.000000e+00> : vector<8x16xf32>
    %30 = tpu.matmul %29, %18, %cst_14 {dimension_numbers = #tpu.dot_dimension_numbers<[1], [0], [0], [1], [0, 0, 1, 1], [], []>} : vector<8x8xbf16>, vector<8x16xbf16>, vector<8x16xf32> -> vector<8x16xf32>
    %31 = tpu.reciprocal %28 {approx = true} : vector<8x1xf32> -> vector<8x1xf32>
    %32 = vector.broadcast %31 : vector<8x1xf32> to vector<8x16xf32>
    %33 = arith.mulf %30, %32 : vector<8x16xf32>
    %c0_15 = arith.constant 0 : index
    %c0_16 = arith.constant 0 : index
    %c0_17 = arith.constant 0 : index
    %34 = vector.load %arg2[%c0_15, %c0_16, %c0_17] : memref<2x8x16xf32, #tpu.memory_space<vmem>>, vector<1x8x16xf32>
    %35 = vector.shape_cast %34 : vector<1x8x16xf32> to vector<8x16xf32>
    %36 = vector.shape_cast %33 : vector<8x16xf32> to vector<1x8x16xf32>
    tpu.vector_store %arg2[%c0_15, %c0_16, %c0_17], %36 {strides = array<i32>} : memref<2x8x16xf32, #tpu.memory_space<vmem>>, vector<1x8x16xf32>,
    %37 = vector.extract_strided_slice %10 {offsets = [8, 0], sizes = [8, 16], strides = [1, 1]} : vector<16x16xbf16> to vector<8x16xbf16>
    %38 = vector.extract_strided_slice %11 {offsets = [8, 0], sizes = [8, 16], strides = [1, 1]} : vector<16x16xbf16> to vector<8x16xbf16>
    %39 = vector.extract_strided_slice %12 {offsets = [8, 0], sizes = [8, 16], strides = [1, 1]} : vector<16x16xbf16> to vector<8x16xbf16>
    %cst_18 = arith.constant dense<0.000000e+00> : vector<8x8xf32>
    %40 = tpu.matmul %37, %38, %cst_18 {dimension_numbers = #tpu.dot_dimension_numbers<[1], [1], [0], [0], [0, 0, 1, 0], [], []>} : vector<8x16xbf16>, vector<8x16xbf16>, vector<8x8xf32> -> vector<8x8xf32>
    %cst_19 = arith.constant -1.000000e+30 : f32
    %41 = vector.broadcast %cst_19 : f32 to vector<8x8xf32>
    %42 = arith.select %15, %40, %41 : vector<8x8xi1>, vector<8x8xf32>
    %cst_20 = arith.constant dense<0xFF800000> : vector<8xf32>
    %43 = vector.multi_reduction <maximumf>, %42, %cst_20 [1] : vector<8x8xf32> to vector<8xf32>
    %44 = vector.shape_cast %43 : vector<8xf32> to vector<8x1xf32>
    %45 = vector.broadcast %44 : vector<8x1xf32> to vector<8x8xf32>
    %46 = arith.subf %42, %45 : vector<8x8xf32>
    %47 = math.exp %46 : vector<8x8xf32>
    %cst_21 = arith.constant dense<0.000000e+00> : vector<8xf32>
    %48 = vector.multi_reduction <add>, %47, %cst_21 [1] : vector<8x8xf32> to vector<8xf32>
    %49 = vector.shape_cast %48 : vector<8xf32> to vector<8x1xf32>
    %50 = arith.truncf %47 : vector<8x8xf32> to vector<8x8xbf16>
    %cst_22 = arith.constant dense<0.000000e+00> : vector<8x16xf32>
    %51 = tpu.matmul %50, %39, %cst_22 {dimension_numbers = #tpu.dot_dimension_numbers<[1], [0], [0], [1], [0, 0, 1, 1], [], []>} : vector<8x8xbf16>, vector<8x16xbf16>, vector<8x16xf32> -> vector<8x16xf32>
    %52 = tpu.reciprocal %49 {approx = true} : vector<8x1xf32> -> vector<8x1xf32>
    %53 = vector.broadcast %52 : vector<8x1xf32> to vector<8x16xf32>
    %54 = arith.mulf %51, %53 : vector<8x16xf32>
    %c1_23 = arith.constant 1 : index
    %c0_24 = arith.constant 0 : index
    %c0_25 = arith.constant 0 : index
    %55 = vector.load %arg2[%c1_23, %c0_24, %c0_25] : memref<2x8x16xf32, #tpu.memory_space<vmem>>, vector<1x8x16xf32>
    %56 = vector.shape_cast %55 : vector<1x8x16xf32> to vector<8x16xf32>
    %57 = vector.shape_cast %54 : vector<8x16xf32> to vector<1x8x16xf32>
    tpu.vector_store %arg2[%c1_23, %c0_24, %c0_25], %57 {strides = array<i32>} : memref<2x8x16xf32, #tpu.memory_space<vmem>>, vector<1x8x16xf32>,
    return
  }
}

</mosaic_0001>

<bundles_post_ra>
// kernel: self_attention_decoder.1
= control target key start
LH: loop header
LB: loop body
LE: loop exit
PB: predicated region body
PF: predicated region fallthrough
CT: control target
= control target key end

     0   :  { %v574_v1 = vmov 0.0   ;;  %vm575_vm0 = vmmov 0   ;;  %vm36_vm1 = vcmask 261120   ;;  %s663_s0 = inlined_call_operand.vmem [shape: bf16[16,32], index: 0, kind: input, shape index: {}]   ;;  %s664_s1 = inlined_call_operand.vmem [shape: bf16[3,32,16], index: 1, kind: input, shape index: {}]   ;;  %s665_s2 = inlined_call_operand.hbm [shape: f32[2,8,16], index: 2, kind: output, shape index: {}]  }
   0x1   :  { %v535_v0 = vld [vmem:[%s664_s1 + $0x10] sm:$0xff]   ;;  %490 = vmatprep.subr.bf16.mxu1 %v574_v1  ;;  %v536_v2 = vld [vmem:[%s664_s1 + $0x18] sm:$0xff]   ;;  %482 = vmatprep.subr.bf16.mxu0 %v574_v1  ;;  %v537_v3 = vld [vmem:[%s664_s1] sm:$0xff]  }
   0x2   :  { %491 = vmatpush3.bf16.msra.mxu1 %v535_v0  ;;  %494 = vmatprep.mubr.msk.bf16.mxu1 %vm575_vm0, %v574_v1  ;;  %v538_v4 = vld [vmem:[%s663_s0] sm:$0xff]   ;;  %v539_v5 = vld [vmem:[%s664_s1 + $0x8] sm:$0xff]  }
   0x3   :  { %492 = vmatprep.subr.bf16.mxu1 %v574_v1  ;;  %486 = vmatprep.mubr.msk.bf16.mxu0 %vm575_vm0, %v574_v1 }
   0x4   :  { %483 = vmatpush3.bf16.msra.mxu0 %v537_v3 }
   0x5   :  { %484 = vmatprep.subr.bf16.mxu0 %v574_v1 }
   0x6   :  { %493 = vmatpush3.bf16.msra.mxu1 %v536_v2 }
   0x7   :  { %7 = vsyncpa [#allocation3], 0  ;;  %506 = vmatprep.subr.bf16.mxu1 %v574_v1  ;;  %v540_v6 = vld [vmem:[%s664_s1 + $0x20] sm:$0xff]   ;;  %v541_v7 = vld [vmem:[%s664_s1 + $0x28] sm:$0xff]   ;;  %vm205_vm2 = vcmask 130048   ;;  %v200_v22 = vlaneseq  ;;  %vm253_vm4 = vcmask 64512  }
   0x8   :  { %485 = vmatpush3.bf16.msra.mxu0 %v539_v5  ;;  %vm267_vm5 = vcmask 1043456   ;;  %s576_s1 = smov [#allocation2]  }
   0x9   :  { %495 = vmatmul.mubr.msk.bf16.vlgmr.msra.gmra.mrb[0].mxu1 %vm36_vm1, %v538_v4  ;;  %498 = vmatprep.subr.bf16.mxu0 %v574_v1  ;;  %v201_v23 = vshrl.u32 %v200_v22, 7  ;;  %v203_v24 = vand.u32 127, %v200_v22  ;;  %s432_s22 = sshll.u32 %s576_s1, 4  ;;  %s433_s22 = int_to_ptr.vmem [resolvable:$true] %s432_s22 }
   0xa   :  { %508 = vmatprep.mubr.msk.bf16.mxu1 %vm575_vm0, %v574_v1  ;;  %s550_s23 = scalar_lea.vmem %s433_s22, 256  ;;  %p555_p1 = scmp.lt.s32.totalorder %s433_s22, %s433_s22 }
   0xb   :  { %487 = vmatmul.mubr.msk.bf16.vlgmr.msra.gmra.mrb[0].mxu0 %vm36_vm1, %v538_v4  ;;  %vm204_vm3 = vcmp.le.s32.totalorder %v203_v24, %v201_v23  ;;  %p551_p0 = scmp.ne.s32.totalorder %s433_s22, %s550_s23  ;;  %p556_p2 = scmp.lt.s32.totalorder %s550_s23, %s550_s23 }
   0xc   :  { %502 = vmatprep.mubr.msk.bf16.mxu0 %vm575_vm0, %v574_v1  ;;  %499 = vmatpush3.bf16.msra.mxu0 %v540_v6 }
   0xd   :  { %500 = vmatprep.subr.bf16.mxu0 %v574_v1  ;;  %p557_p3 = por %p556_p2, %p555_p1 }
   0xf   :  { %p558_p4 = pnand %p557_p3, %p551_p0 }
  0x10   :  { %501 = vmatpush3.bf16.msra.mxu0 %v541_v7 }
  0x11   :  { %512 = vmatprep.subr.bf16.mxu0 %v574_v1 }
  0x13   :  { %503 = vmatmul.mubr.msk.bf16.vlgmr.msra.gmra.mrb[4].mxu0 %vm36_vm1, %v538_v4 }
  0x14   :  { %514 = vmatprep.mubr.msk.bf16.mxu0 %vm575_vm0, %v574_v1 }
  0xdc   :  { %v132_v8 = vpop.f32.mrb[0].mxu1 }
  0xdd   :  { %v496_v9 = vpop.f32.mrb[1].mxu1 }
  0xde   :  { %v135_v10 = vpop.f32.mrb[2].mxu1  ;;  %v74_v11 = vpop.f32.mrb[0].mxu0 }
  0xdf   :  { %v198_v12 = vpack.c.bf16 %v135_v10, %v132_v8  ;;  %v497_v13 = vpop.f32.mrb[3].mxu1  ;;  %v488_v14 = vpop.f32.mrb[1].mxu0 }
  0xe0   :  { %v77_v15 = vpop.f32.mrb[2].mxu0 }
  0xe1   :  { %v210_v16 = vsel %vm205_vm2, %v198_v12, 0  ;;  %v197_v17 = vpack.c.bf16 %v77_v15, %v74_v11  ;;  %v489_v18 = vpop.f32.mrb[3].mxu0  ;;  %v317_v19 = vrot.slane %v198_v12, 4 }
  0xe2   :  { %507 = vmatpush3.bf16.xpose.msra.mxu1 %v210_v16 }
  0xe3   :  { %518 = vmatprep.subr.bf16.mxu1 %v574_v1  ;;  %v322_v20 = vsel %vm205_vm2, %v317_v19, 0  ;;  %v315_v21 = vrot.slane %v197_v17, 4 }
  0xe6   :  { %v190_v37 = vpop.f32.mrb[4].mxu0 }
  0xe7   :  { %v504_v38 = vpop.f32.mrb[5].mxu0 }
  0xe8   :  { %v193_v39 = vpop.f32.mrb[6].mxu0 }
  0xe9   :  { %509 = vmatmul.mubr.msk.bf16.vlgmr.msra.gmra.mrb[4].mxu1 %vm205_vm2, %v197_v17  ;;  %v199_v40 = vpack.c.bf16 %v193_v39, %v190_v37  ;;  %v505_v41 = vpop.f32.mrb[7].mxu0 }
  0xea   :  { %519 = vmatpush3.bf16.xpose.msra.mxu1 %v322_v20  ;;  %520 = vmatprep.mubr.msk.bf16.mxu1 %vm575_vm0, %v574_v1 }
  0xeb   :  { %v269_v42 = vsel %vm267_vm5, %v199_v40, 0  ;;  %v376_v43 = vrot.slane %v199_v40, 4 }
  0xec   :  { %513 = vmatpush3.bf16.msra.mxu0 %v269_v42 }
  0xed   :  { %524 = vmatprep.subr.bf16.mxu0 %v574_v1  ;;  %v381_v44 = vsel %vm267_vm5, %v376_v43, 0 }
  0xf1   :  { %521 = vmatmul.mubr.msk.bf16.vlgmr.msra.gmra.mrb[8].mxu1 %vm205_vm2, %v315_v21 }
 0x1bc   :  { %v246_v25 = vpop.f32.mrb[4].mxu1 }
 0x1bd   :  { %v252_v26 = vsel %vm204_vm3, %v246_v25, -1e+30  ;;  %v510_v27 = vpop.f32.mrb[5].mxu1 }
 0x1be   :  { %v249_v28 = vpop.f32.mrb[6].mxu1  ;;  %v254_v29 = vsel %vm253_vm4, %v252_v26, -inf }
 0x1bf   :  { %255 = vmax.xlane.f32.xlu0 %v254_v29  ;;  %v511_v30 = vpop.f32.mrb[7].mxu1 }
 0x1c4   :  { %v358_v31 = vpop.f32.mrb[8].mxu1 }
 0x1c5   :  { %v364_v32 = vsel %vm204_vm3, %v358_v31, -1e+30  ;;  %v522_v33 = vpop.f32.mrb[9].mxu1 }
 0x1c6   :  { %v361_v34 = vpop.f32.mrb[10].mxu1  ;;  %v365_v35 = vsel %vm253_vm4, %v364_v32, -inf }
 0x1c7   :  { %366 = vmax.xlane.f32.xlu0 %v365_v35  ;;  %v523_v36 = vpop.f32.mrb[11].mxu1 }
 0x24c   :  { %v256_v45 = vpop.xlane.xlu0 %255 }
 0x24d   :  { %v257_v46 = vsub.f32 %v252_v26, %v256_v45 }
 0x24f   :  { %v258_v47 = vmul.f32 1.442695, %v257_v46 }
 0x251   :  { %542 = vpow2.f32 %v258_v47 }
 0x254   :  { %v367_v48 = vpop.xlane.xlu0 %366 }
 0x255   :  { %v368_v49 = vsub.f32 %v364_v32, %v367_v48 }
 0x257   :  { %v369_v50 = vmul.f32 1.442695, %v368_v49 }
 0x259   :  { %544 = vpow2.f32 %v369_v50 }
 0x25b   :  { %v543_v51 = vpop.eup %542 }
 0x25c   :  { %v260_v52 = vsel %vm253_vm4, %v543_v51, 0.0  ;;  %v263_v53 = vpack.c.bf16 %v543_v51, %v543_v51 }
 0x25d   :  { %261 = vadd.xlane.f32.xlu1 %v260_v52 }
 0x25e   :  { %515 = vmatmul.mubr.msk.bf16.vlgmr.msra.gmra.mrb[8].mxu0 %vm253_vm4, %v263_v53 }
 0x25f   :  { %525 = vmatpush3.bf16.msra.mxu0 %v381_v44  ;;  %526 = vmatprep.mubr.msk.bf16.mxu0 %vm575_vm0, %v574_v1 }
 0x263   :  { %v545_v54 = vpop.eup %544 }
 0x264   :  { %v371_v55 = vsel %vm253_vm4, %v545_v54, 0.0  ;;  %v374_v56 = vpack.c.bf16 %v545_v54, %v545_v54 }
 0x265   :  { %372 = vadd.xlane.f32.xlu1 %v371_v55 }
 0x266   :  { %527 = vmatmul.mubr.msk.bf16.vlgmr.msra.gmra.mrb[12].mxu0 %vm253_vm4, %v374_v56 }
 0x2ea   :  { %v262_v57 = vpop.xlane.xlu1 %261 }
 0x2eb   :  { %546 = vrcp.f32 %v262_v57 }
 0x2f2   :  { %v373_v58 = vpop.xlane.xlu1 %372 }
 0x2f3   :  { %548 = vrcp.f32 %v373_v58 }
 0x2f5   :  { %v547_v59 = vpop.eup %546 }
 0x2fd   :  { %v549_v1 = vpop.eup %548 }
 0x331   :  { %v305_v60 = vpop.f32.mrb[8].mxu0 }
 0x332   :  { %v312_v61 = vmul.f32 %v547_v59, %v305_v60  ;;  %v516_v62 = vpop.f32.mrb[9].mxu0 }
 0x333   :  { %v308_v63 = vpop.f32.mrb[10].mxu0 }
 0x334   :  { %313 = vst.msk [vmem:[#allocation2] sm:$0xff] %vm205_vm2, %v312_v61  ;;  %v517_v0 = vpop.f32.mrb[11].mxu0 }
 0x339   :  { %v417_v2 = vpop.f32.mrb[12].mxu0 }
 0x33a   :  { %v424_v3 = vmul.f32 %v549_v1, %v417_v2  ;;  %v528_v4 = vpop.f32.mrb[13].mxu0 }
 0x33b   :  { %v420_v5 = vpop.f32.mrb[14].mxu0 }
 0x33c   :  { %426 = vst.msk [vmem:[#allocation2 + $0x8] sm:$0xff] %vm205_vm2, %v424_v3  ;;  %v529_v6 = vpop.f32.mrb[15].mxu0 }
 0x33d   :  { %561 = shalt.err (!%p558_p4)
}
 0x33e   :  { %s562_s26 = scalar_lea.hbm %s665_s2, 256 }
 0x33f   :  { %p563_p5 = scmp.ne.s32.totalorder %s665_s2, %s562_s26  ;;  %p566_p6 = scmp.lt.u32.totalorder %s562_s26, %s665_s2 }
 0x341   :  { %p568_p7 = pnand %p566_p6, %p563_p5 }
 0x343   :  { %571 = shalt.err (!%p568_p7)
}
 0x344   :  { %s577_s3 = smov 128   ;;  %s578_s4 = smov 8  }
 0x345   :  { %438 = dma.vmem_to_hbm [thread:$0]  %s433_s22, 256, %s665_s2, [#allocation3], %s577_s3, %s577_s3, %s578_s4  }
 0x346   :  { %572 = dma.done.wait [#allocation3], 256  }
 0x347   :  { %573 = vsyncadd [#allocation3], 4294967040 }
 0x348   :  { %442 = vsyncpa [#allocation3], 1 }

</bundles_post_ra>
